<compile_context>
chip_gen: v7x
topology: tpu7x:2x2x1
jax: 0.10.0
libtpu: 0.0.40
codegen_flags: <defaults>
</compile_context>

<pallas_src>
import functools

import numpy as np
import jax
import jax.numpy as jnp
from jax import lax
from jax.experimental import pallas as pl
from jax.experimental.pallas import tpu as pltpu

MASK_VALUE = float(np.finfo(np.float32).min)   # torch.finfo(torch.float).min


def _round_up(x, m):
    return ((x + m - 1) // m) * m


def _pad_rows(x, rows):
    pad = rows - x.shape[0]
    if pad == 0:
        return x
    return jnp.pad(x, ((0, pad),) + ((0, 0),) * (x.ndim - 1))


# ----------------------------------------------------------------------------
# Kernel 1: row-tiled linear   y = x @ W + b   (bf16 operands, f32 accumulate)
# ----------------------------------------------------------------------------
def _linear_kernel(x_ref, w_ref, b_ref, o_ref, *, relu):
    acc = jnp.dot(x_ref[...].astype(jnp.bfloat16), w_ref[...],
                  preferred_element_type=jnp.float32)
    acc = acc + b_ref[...]
    if relu:
        acc = jnp.maximum(acc, 0.0)
    o_ref[...] = acc.astype(o_ref.dtype)


def pallas_linear(x, w_bf16, b, *, relu=False, out_dtype=jnp.float32,
                  row_block=1024):
    """x: (M, K), w_bf16: (K, N) bf16, b: (N,) -> (M, N)."""
    M, K = x.shape
    N = w_bf16.shape[1]
    tm = M if M <= row_block else row_block      # row_block is a multiple of 8
    Mp = _round_up(M, tm)
    xp = _pad_rows(x, Mp)
    b2 = jnp.asarray(b, jnp.float32).reshape(1, N)
    out = pl.pallas_call(
        functools.partial(_linear_kernel, relu=relu),
        out_shape=jax.ShapeDtypeStruct((Mp, N), out_dtype),
        grid=(Mp // tm,),
        in_specs=[
            pl.BlockSpec((tm, K), lambda i: (i, 0)),
            pl.BlockSpec((K, N), lambda i: (0, 0)),   # weight resident
            pl.BlockSpec((1, N), lambda i: (0, 0)),
        ],
        out_specs=pl.BlockSpec((tm, N), lambda i: (i, 0)),
        compiler_params=pltpu.CompilerParams(dimension_semantics=("parallel",)),
    )(xp, w_bf16, b2)
    return out[:M]


# ----------------------------------------------------------------------------
# Kernel 2: fused multi-head attention (mask built in-kernel, scale folded in)
#   q/k/v: (Bp*heads, L, E) bf16 laid out as (Bp, heads, L, E) flattened.
#   kmask: (Bp, 1, L) f32 key-validity per sequence (1 = keep, 0 = mask).
# Outputs: ctx (Bp*heads, L, E) bf16, head-mean weights (Bp, L, L) f32,
#          per-head masked scores (Bp, heads, L, L) f32.
# ----------------------------------------------------------------------------
def _attention_kernel(q_ref, k_ref, v_ref, km_ref, o_ref, w_ref, s_ref,
                      *, heads, causal, sm_scale):
    sg = km_ref.shape[0]
    L = q_ref.shape[1]
    q = q_ref[...]
    k = k_ref[...]
    v = v_ref[...]
    scores = jnp.einsum('bqd,bkd->bqk', q, k,
                        preferred_element_type=jnp.float32) * sm_scale
    scores = scores.reshape(sg, heads, L, L)          # leading-dims-only split
    allow = km_ref[...][:, :, None, :] > 0.0          # (sg, 1, 1, L)
    if causal:
        qpos = lax.broadcasted_iota(jnp.int32, (L, L), 0)
        kpos = lax.broadcasted_iota(jnp.int32, (L, L), 1)
        allow = jnp.logical_and(allow, (kpos <= qpos)[None, None, :, :])
    scores = jnp.where(allow, scores, MASK_VALUE)
    s_ref[...] = scores
    m = jnp.max(scores, axis=-1, keepdims=True)
    e = jnp.exp(scores - m)
    p = e / jnp.sum(e, axis=-1, keepdims=True)        # f32 softmax
    w_ref[...] = jnp.mean(p, axis=1)                  # head average
    p3 = p.reshape(sg * heads, L, L).astype(jnp.bfloat16)
    ctx = jnp.einsum('bqk,bkd->bqd', p3, v, preferred_element_type=jnp.float32)
    o_ref[...] = ctx.astype(o_ref.dtype)


def pallas_attention(q, k, v, kmask, *, heads, causal, sm_scale):
    BH, L, E = q.shape
    Bp = BH // heads
    # batch several (sequence x all-heads) groups per grid step for MXU occupancy
    sg = max(1, min(Bp, 256 // max(1, heads * L)))
    Bpp = _round_up(Bp, sg)
    if Bpp != Bp:
        q = _pad_rows(q, Bpp * heads)
        k = _pad_rows(k, Bpp * heads)
        v = _pad_rows(v, Bpp * heads)
        kmask = _pad_rows(kmask, Bpp)
    km3 = kmask.reshape(Bpp, 1, L).astype(jnp.float32)

    o, w, s = pl.pallas_call(
        functools.partial(_attention_kernel, heads=heads, causal=causal,
                          sm_scale=sm_scale),
        out_shape=(
            jax.ShapeDtypeStruct((Bpp * heads, L, E), jnp.bfloat16),
            jax.ShapeDtypeStruct((Bpp, L, L), jnp.float32),
            jax.ShapeDtypeStruct((Bpp, heads, L, L), jnp.float32),
        ),
        grid=(Bpp // sg,),
        in_specs=[
            pl.BlockSpec((sg * heads, L, E), lambda i: (i, 0, 0)),
            pl.BlockSpec((sg * heads, L, E), lambda i: (i, 0, 0)),
            pl.BlockSpec((sg * heads, L, E), lambda i: (i, 0, 0)),
            pl.BlockSpec((sg, 1, L), lambda i: (i, 0, 0)),
        ],
        out_specs=(
            pl.BlockSpec((sg * heads, L, E), lambda i: (i, 0, 0)),
            pl.BlockSpec((sg, L, L), lambda i: (i, 0, 0)),
            pl.BlockSpec((sg, heads, L, L), lambda i: (i, 0, 0, 0)),
        ),
        compiler_params=pltpu.CompilerParams(dimension_semantics=("parallel",)),
    )(q, k, v, km3)
    return o[:Bp * heads], w[:Bp], s[:Bp]


# ----------------------------------------------------------------------------
# Kernel 3: fused unify-heads + residual + LN1 + FFN(relu) + residual + LN2
# ----------------------------------------------------------------------------
def _ln(x, g, b):
    mu = jnp.mean(x, axis=-1, keepdims=True)
    var = jnp.mean((x - mu) ** 2, axis=-1, keepdims=True)
    return (x - mu) * lax.rsqrt(var + 1e-5) * g + b


def _post_attn_kernel(att_ref, x_ref,
                      wu_ref, bu_ref, g1_ref, be1_ref,
                      f1w_ref, f1b_ref, f2w_ref, f2b_ref,
                      g2_ref, be2_ref, y_ref):
    u = jnp.dot(att_ref[...], wu_ref[...],
                preferred_element_type=jnp.float32) + bu_ref[...]
    y = u + x_ref[...]                                   # residual (f32)
    y = _ln(y, g1_ref[...], be1_ref[...])
    h = jnp.dot(y.astype(jnp.bfloat16), f1w_ref[...],
                preferred_element_type=jnp.float32) + f1b_ref[...]
    h = jnp.maximum(h, 0.0)
    h = jnp.dot(h.astype(jnp.bfloat16), f2w_ref[...],
                preferred_element_type=jnp.float32) + f2b_ref[...]
    y = _ln(h + y, g2_ref[...], be2_ref[...])
    # TODO(synk): dropout(p=0.0) in the reference is a no-op and is omitted.
    y_ref[...] = y.astype(y_ref.dtype)


def _const_spec(shape):
    return pl.BlockSpec(shape, lambda i: (0,) * len(shape))


def pallas_post_attention(att2, x2, bp, *, row_block=1024):
    M, HE = att2.shape
    E = x2.shape[1]
    F = bp['ff1_w'].shape[1]
    tm = M if M <= row_block else row_block
    Mp = _round_up(M, tm)
    att2p = _pad_rows(att2, Mp)
    x2p = _pad_rows(x2, Mp)
    y = pl.pallas_call(
        _post_attn_kernel,
        out_shape=jax.ShapeDtypeStruct((Mp, E), jnp.float32),
        grid=(Mp // tm,),
        in_specs=[
            pl.BlockSpec((tm, HE), lambda i: (i, 0)),
            pl.BlockSpec((tm, E), lambda i: (i, 0)),
            _const_spec((HE, E)), _const_spec((1, E)),     # wu, bu
            _const_spec((1, E)), _const_spec((1, E)),      # ln1 g, b
            _const_spec((E, F)), _const_spec((1, F)),      # ff1
            _const_spec((F, E)), _const_spec((1, E)),      # ff2
            _const_spec((1, E)), _const_spec((1, E)),      # ln2 g, b
        ],
        out_specs=pl.BlockSpec((tm, E), lambda i: (i, 0)),
        compiler_params=pltpu.CompilerParams(dimension_semantics=("parallel",)),
    )(att2p, x2p, bp['wu'], bp['bu2'], bp['ln1_g2'], bp['ln1_b2'],
      bp['ff1_w'], bp['ff1_b2'], bp['ff2_w'], bp['ff2_b2'],
      bp['ln2_g2'], bp['ln2_b2'])
    return y[:M]


# ----------------------------------------------------------------------------
# Transformer block (wide self-attention, post-norm, 4x FFN) = 3 pallas_calls
# ----------------------------------------------------------------------------
def transformer_block(x, kmask, bp, *, heads, causal):
    # x: (Bp, L, E) f32 ;  kmask: (Bp, L) key validity
    Bp, L, E = x.shape
    h = heads
    x2 = x.reshape(Bp * L, E)

    # fused QKV projection -> bf16 (halves HBM traffic to the attention kernel)
    qkv = pallas_linear(x2, bp['wqkv'], bp['qkv_b'], out_dtype=jnp.bfloat16)
    qkv = qkv.reshape(Bp, L, 3, h, E).transpose(2, 0, 3, 1, 4)  # (3, Bp, h, L, E)
    q = qkv[0].reshape(Bp * h, L, E)
    k = qkv[1].reshape(Bp * h, L, E)
    v = qkv[2].reshape(Bp * h, L, E)

    sm_scale = 1.0 / (float(E) ** 0.5)     # == (q / e**0.25) @ (k / e**0.25)^T
    o, w, s = pallas_attention(q, k, v, kmask, heads=h, causal=causal,
                               sm_scale=sm_scale)

    att2 = o.reshape(Bp, h, L, E).transpose(0, 2, 1, 3).reshape(Bp * L, h * E)
    y2 = pallas_post_attention(att2, x2, bp)
    return y2.reshape(Bp, L, E), w, s


# ----------------------------------------------------------------------------
# Time_Agent_Transformer forward (StarCraft branch, version='temporal')
# ----------------------------------------------------------------------------
def time_agent_transformer_forward(params, ally_obs, enemy_obs, actions,
                                   team_masks, agent_masks, *, heads, depth):
    b, n_a, t, ao = ally_obs.shape
    _, n_e, _, eo = enemy_obs.shape
    emb = params['emb']

    ally_emb = pallas_linear(ally_obs.reshape(-1, ao),
                             params['ally_w'], params['ally_b']
                             ).reshape(b, n_a, t, emb)
    enemy_emb = pallas_linear(enemy_obs.reshape(-1, eo),
                              params['enemy_w'], params['enemy_b']
                              ).reshape(b, n_e, t, emb)
    enemy_emb = enemy_emb.mean(axis=1, keepdims=True)          # (b,1,t,emb)

    pos_emb = params['pos_emb'][:t][None, None]                # (1,1,t,emb)
    ag_emb = params['agent_emb'][None, :, None]                # (1,n_a,1,emb)
    act_emb = params['act_emb'][actions]                       # (b,n_a,t,emb)

    x = (ally_emb + enemy_emb + act_emb + ag_emb + pos_emb
         ).reshape(b * n_a, t, emb)

    # key-validity vectors (masks are expanded to (causal x key) inside kernel)
    amT = agent_masks.transpose(0, 2, 1)                       # (b, n_a, t)
    kmask_t = amT.reshape(b * n_a, t)                          # temporal keys
    kmask_a = agent_masks.reshape(b * t, n_a)                  # agent keys

    temporal_weights, agent_weights = [], []
    temporal_scores, agent_scores = [], []

    for d in range(depth):
        # --- temporal block over time axis (causal) ---
        x, w, s = transformer_block(x, kmask_t, params['tblocks'][d],
                                    heads=heads, causal=True)
        temporal_weights.append(w.reshape(b, n_a, t, t))
        temporal_scores.append(
            s.reshape(b, n_a, heads, t, t).transpose(0, 2, 1, 3, 4))

        # --- agent block over agent axis (no causal mask) ---
        xa = x.reshape(b, n_a, t, emb).transpose(0, 2, 1, 3).reshape(b * t, n_a, emb)
        xa, wa, sa = transformer_block(xa, kmask_a, params['ablocks'][d],
                                       heads=heads, causal=False)
        agent_weights.append(wa.reshape(b, t, n_a, n_a))
        agent_scores.append(
            sa.reshape(b, t, heads, n_a, n_a).transpose(0, 2, 1, 3, 4))
        x = xa.reshape(b, t, n_a, emb).transpose(0, 2, 1, 3).reshape(b * n_a, t, emb)

    temporal_weights = jnp.stack(temporal_weights, 0)  # (depth,b,n_a,t,t)
    agent_weights = jnp.stack(agent_weights, 0)        # (depth,b,t,n_a,n_a)
    temporal_scores = jnp.stack(temporal_scores, 0)    # (depth,b,h,n_a,t,t)
    agent_scores = jnp.stack(agent_scores, 0)          # (depth,b,h,t,n_a,n_a)

    am = agent_masks
    amT = am.transpose(0, 2, 1)
    agent_weights = (agent_weights
                     * am[None, :, :, :, None] * am[None, :, :, None, :])
    temporal_weights = (temporal_weights
                        * amT[None, :, :, :, None] * amT[None, :, :, None, :])
    agent_scores = (agent_scores
                    * am[None, :, None, :, :, None] * am[None, :, None, :, None, :])
    temporal_scores = (temporal_scores
                       * amT[None, :, None, :, :, None] * amT[None, :, None, :, None, :])

    # version == 'temporal'
    xr = x.reshape(b, n_a, t, emb).transpose(0, 2, 1, 3)            # (b,t,n_a,emb)
    xr = xr.sum(axis=-2) / (am.sum(axis=-1, keepdims=True) + 1e-5)  # (b,t,emb)
    r = pallas_linear(xr.reshape(b * t, emb),
                      params['r_w'], params['r_b']).reshape(b, t)
    rewards = (r * team_masks)[..., None]
    rewards = jnp.repeat(rewards, n_a, axis=-1)                     # (b,t,n_a)

    return rewards, temporal_weights, agent_weights, temporal_scores, agent_scores


# ----------------------------------------------------------------------------
# Deterministic parameter initialization (synthetic; not a checkpoint load)
# ----------------------------------------------------------------------------
def _dense_init(key, fan_in, fan_out):
    w = jax.random.normal(key, (fan_in, fan_out), jnp.float32) / np.sqrt(fan_in)
    b = jnp.zeros((fan_out,), jnp.float32)
    return w, b


def init_params(key, *, ally_obs_shape, enemy_obs_shape, emb, heads, depth,
                seq_length, n_agents, n_actions):
    keys = jax.random.split(key, 8 + 2 * depth)
    p = {'emb': emb}
    p['ally_w'], p['ally_b'] = _dense_init(keys[0], ally_obs_shape, emb)
    p['enemy_w'], p['enemy_b'] = _dense_init(keys[1], enemy_obs_shape, emb)
    p['act_emb'] = jax.random.normal(keys[2], (n_actions, emb), jnp.float32) * 0.02
    p['pos_emb'] = jax.random.normal(keys[3], (seq_length, emb), jnp.float32) * 0.02
    p['agent_emb'] = jax.random.normal(keys[4], (n_agents, emb), jnp.float32) * 0.02
    p['r_w'], p['r_b'] = _dense_init(keys[5], emb, 1)

    def block_params(k):
        ks = jax.random.split(k, 6)
        bp = {}
        bp['wq'], _ = _dense_init(ks[0], emb, emb * heads)
        bp['wk'], _ = _dense_init(ks[1], emb, emb * heads)
        bp['wv'], _ = _dense_init(ks[2], emb, emb * heads)
        bp['wu'], bp['bu'] = _dense_init(ks[3], emb * heads, emb)
        bp['ff1_w'], bp['ff1_b'] = _dense_init(ks[4], emb, 4 * emb)
        bp['ff2_w'], bp['ff2_b'] = _dense_init(ks[5], 4 * emb, emb)
        bp['ln1_g'] = jnp.ones((emb,), jnp.float32)
        bp['ln1_b'] = jnp.zeros((emb,), jnp.float32)
        bp['ln2_g'] = jnp.ones((emb,), jnp.float32)
        bp['ln2_b'] = jnp.zeros((emb,), jnp.float32)
        return bp

    p['tblocks'] = [block_params(keys[6 + 2 * d]) for d in range(depth)]
    p['ablocks'] = [block_params(keys[7 + 2 * d]) for d in range(depth)]
    return p


def prepare_params(p, *, heads):
    """One-time prep: fuse QKV weights, cast MXU weights to bf16, shape biases."""
    emb = p['emb']
    q = {'emb': emb,
         'ally_w': p['ally_w'].astype(jnp.bfloat16), 'ally_b': p['ally_b'],
         'enemy_w': p['enemy_w'].astype(jnp.bfloat16), 'enemy_b': p['enemy_b'],
         'act_emb': p['act_emb'], 'pos_emb': p['pos_emb'],
         'agent_emb': p['agent_emb'],
         'r_w': p['r_w'].astype(jnp.bfloat16), 'r_b': p['r_b']}

    def prep_block(bp):
        E = emb
        return {
            'wqkv': jnp.concatenate([bp['wq'], bp['wk'], bp['wv']],
                                    axis=1).astype(jnp.bfloat16),
            'qkv_b': jnp.zeros((3 * heads * E,), jnp.float32),
            'wu': bp['wu'].astype(jnp.bfloat16),
            'bu2': bp['bu'].reshape(1, E).astype(jnp.float32),
            'ff1_w': bp['ff1_w'].astype(jnp.bfloat16),
            'ff1_b2': bp['ff1_b'].reshape(1, -1).astype(jnp.float32),
            'ff2_w': bp['ff2_w'].astype(jnp.bfloat16),
            'ff2_b2': bp['ff2_b'].reshape(1, E).astype(jnp.float32),
            'ln1_g2': bp['ln1_g'].reshape(1, E).astype(jnp.float32),
            'ln1_b2': bp['ln1_b'].reshape(1, E).astype(jnp.float32),
            'ln2_g2': bp['ln2_g'].reshape(1, E).astype(jnp.float32),
            'ln2_b2': bp['ln2_b'].reshape(1, E).astype(jnp.float32),
        }

    q['tblocks'] = [prep_block(bp) for bp in p['tblocks']]
    q['ablocks'] = [prep_block(bp) for bp in p['ablocks']]
    return q


# ----------------------------------------------------------------------------
if __name__ == "__main__":
    # small shapes consistent with the module's forward
    b, n_agents, n_enemies, t = 2, 3, 2, 8
    ally_obs_shape, enemy_obs_shape = 10, 6
    n_actions, heads, depth, emb = 5, 2, 2, 32

    key = jax.random.PRNGKey(0)
    k_par, k_ally, k_enemy, k_act = jax.random.split(key, 4)

    raw_params = init_params(
        k_par, ally_obs_shape=ally_obs_shape, enemy_obs_shape=enemy_obs_shape,
        emb=emb, heads=heads, depth=depth, seq_length=t,
        n_agents=n_agents, n_actions=n_actions)
    params = prepare_params(raw_params, heads=heads)

    ally_obs = jax.random.normal(k_ally, (b, n_agents, t, ally_obs_shape), jnp.float32)
    enemy_obs = jax.random.normal(k_enemy, (b, n_enemies, t, enemy_obs_shape), jnp.float32)
    actions = jax.random.randint(k_act, (b, n_agents, t), 0, n_actions, jnp.int32)
    team_masks = jnp.ones((b, t), jnp.float32)
    agent_masks = jnp.ones((b, t, n_agents), jnp.float32)

    outs = time_agent_transformer_forward(
        params, ally_obs, enemy_obs, actions, team_masks, agent_masks,
        heads=heads, depth=depth)
    outs = jax.block_until_ready(outs)

    rewards, tw, aw, ts, ascore = outs
    assert rewards.shape == (b, t, n_agents)
    assert tw.shape == (depth, b, n_agents, t, t)
    assert aw.shape == (depth, b, t, n_agents, n_agents)
    assert ts.shape == (depth, b, heads, n_agents, t, t)
    assert ascore.shape == (depth, b, heads, t, n_agents, n_agents)
    assert all(bool(jnp.all(jnp.isfinite(o))) for o in (rewards, tw, aw))
    print("KERNEL_OK")
</pallas_src>

<mosaic_0001>
module attributes {stable_mosaic.version = 11 : i64} {
  func.func @_linear_kernel(%arg0: i32, %arg1: memref<48x10xf32, #tpu.memory_space<vmem>>, %arg2: memref<10x32xbf16, #tpu.memory_space<vmem>>, %arg3: memref<1x32xf32, #tpu.memory_space<vmem>>, %arg4: memref<48x32xf32, #tpu.memory_space<vmem>>) attributes {dimension_semantics = [#tpu.dimension_semantics<parallel>], iteration_bounds = array<i64: 1>, scalar_prefetch = 0 : i64, scratch_operands = 0 : i64, tpu.core_type = #tpu.core_type<tc>, window_params = [{transform_indices = @transform_0, window_bounds = array<i64: 48, 10>}, {pipeline_mode = #tpu.pipeline_mode<synchronous>, transform_indices = @transform_1, window_bounds = array<i64: 10, 32>}, {pipeline_mode = #tpu.pipeline_mode<synchronous>, transform_indices = @transform_2, window_bounds = array<i64: 1, 32>}, {transform_indices = @transform_3, window_bounds = array<i64: 48, 32>}]} {
    %c0 = arith.constant 0 : index
    %c0_0 = arith.constant 0 : index
    %0 = vector.load %arg1[%c0, %c0_0] : memref<48x10xf32, #tpu.memory_space<vmem>>, vector<48x10xf32>
    %1 = arith.truncf %0 : vector<48x10xf32> to vector<48x10xbf16>
    %c0_1 = arith.constant 0 : index
    %c0_2 = arith.constant 0 : index
    %2 = vector.load %arg2[%c0_1, %c0_2] : memref<10x32xbf16, #tpu.memory_space<vmem>>, vector<10x32xbf16>
    %cst = arith.constant dense<0.000000e+00> : vector<48x32xf32>
    %3 = tpu.matmul %1, %2, %cst {dimension_numbers = #tpu.dot_dimension_numbers<[1], [0], [0], [1], [0, 0, 1, 1], [], []>} : vector<48x10xbf16>, vector<10x32xbf16>, vector<48x32xf32> -> vector<48x32xf32>
    %c0_3 = arith.constant 0 : index
    %c0_4 = arith.constant 0 : index
    %4 = vector.load %arg3[%c0_3, %c0_4] : memref<1x32xf32, #tpu.memory_space<vmem>>, vector<1x32xf32>
    %5 = vector.broadcast %4 : vector<1x32xf32> to vector<48x32xf32>
    %6 = arith.addf %3, %5 : vector<48x32xf32>
    %c0_5 = arith.constant 0 : index
    %c0_6 = arith.constant 0 : index
    %7 = vector.load %arg4[%c0_5, %c0_6] : memref<48x32xf32, #tpu.memory_space<vmem>>, vector<48x32xf32>
    tpu.vector_store %arg4[%c0_5, %c0_6], %6 {strides = array<i32>} : memref<48x32xf32, #tpu.memory_space<vmem>>, vector<48x32xf32>,
    return
  }
  func.func @transform_0(%arg0: i32) -> (i32, i32) {
    %c0_i32 = arith.constant 0 : i32
    %c0_i32_0 = arith.constant 0 : i32
    return %arg0, %c0_i32 : i32, i32
  }
  func.func @transform_1(%arg0: i32) -> (i32, i32) {
    %c0_i32 = arith.constant 0 : i32
    %c0_i32_0 = arith.constant 0 : i32
    %c0_i32_1 = arith.constant 0 : i32
    return %c0_i32, %c0_i32_0 : i32, i32
  }
  func.func @transform_2(%arg0: i32) -> (i32, i32) {
    %c0_i32 = arith.constant 0 : i32
    %c0_i32_0 = arith.constant 0 : i32
    %c0_i32_1 = arith.constant 0 : i32
    return %c0_i32, %c0_i32_0 : i32, i32
  }
  func.func @transform_3(%arg0: i32) -> (i32, i32) {
    %c0_i32 = arith.constant 0 : i32
    %c0_i32_0 = arith.constant 0 : i32
    return %arg0, %c0_i32 : i32, i32
  }
}

</mosaic_0001>

<bundles_post_ra>
// kernel: tpu_custom_call.1
= control target key start
LH: loop header
LB: loop body
LE: loop exit
PB: predicated region body
PF: predicated region fallthrough
CT: control target
= control target key end

     0   :  { %vm48_vm0 = vcmask 1044480   ;;  %v148_v0 = vmov 0.0   ;;  %vm149_vm1 = vmmov 0   ;;  %vm38_vm2 = vcmask 80896   ;;  %s221_s1 = inlined_call_operand.vmem [shape: bf16[10,32], index: 1, kind: input, shape index: {}]   ;;  %s222_s0 = inlined_call_operand.vmem [shape: f32[48,10], index: 0, kind: input, shape index: {}]   ;;  %s223_s2 = inlined_call_operand.vmem [shape: f32[1,32], index: 2, kind: input, shape index: {}]   ;;  %s224_s3 = inlined_call_operand.vmem [shape: f32[48,32], index: 3, kind: output, shape index: {}]  }
   0x1   :  { %143 = vmatprep.subr.bf16.mxu1 %v148_v0  ;;  %v147_v1 = vld [vmem:[%s221_s1] sm:$0x1f]   ;;  %135 = vmatprep.mubr.msk.bf16.mxu1 %vm149_vm1, %v148_v0  ;;  %v17_v2 = vld [vmem:[%s222_s0 + $0x10] sm:$0xff]  ;;  %v18_v3 = vld [vmem:[%s222_s0 + $0x18] sm:$0xff]  ;;  %vm109_vm3 = vcmask 261120  }
   0x2   :  { %129 = vmatprep.subr.bf16.mxu0 %v148_v0  ;;  %131 = vmatprep.mubr.msk.bf16.mxu0 %vm149_vm1, %v148_v0  ;;  %v15_v4 = vld [vmem:[%s222_s0] sm:$0xff]  ;;  %v50_v5 = vsel %vm48_vm0, %v147_v1, 0  ;;  %v22_v6 = vpack.c.bf16 %v18_v3, %v17_v2  ;;  %v16_v7 = vld [vmem:[%s222_s0 + $0x8] sm:$0xff] }
   0x3   :  { %144 = vmatpush3.bf16.msra.mxu1 %v50_v5  ;;  %130 = vmatpush3.bf16.msra.mxu0 %v50_v5  ;;  %v21_v8 = vpack.c.bf16 %v16_v7, %v15_v4  ;;  %v19_v9 = vld [vmem:[%s222_s0 + $0x20] sm:$0xff]  ;;  %v20_v10 = vld [vmem:[%s222_s0 + $0x28] sm:$0xff] }
   0x4   :  { %v23_v11 = vpack.c.bf16 %v20_v10, %v19_v9  ;;  %v120_v12 = vld [vmem:[%s223_s2] ss:$0 sm:$0xff] }
   0x6   :  { %136 = vmatmul.mubr.msk.bf16.vlgmr.msra.gmra.mrb[0].mxu1 %vm38_vm2, %v22_v6  ;;  %132 = vmatmul.mubr.msk.bf16.vlgmr.msra.gmra.mrb[0].mxu0 %vm38_vm2, %v21_v8 }
   0x7   :  { %139 = vmatprep.mubr.msk.bf16.mxu1 %vm149_vm1, %v148_v0 }
   0xe   :  { %140 = vmatmul.mubr.msk.bf16.gmra.mrb[4].mxu1 %vm38_vm2, %v23_v11 }
  0xd9   :  { %v94_v13 = vpop.f32.mrb[0].mxu1  ;;  %v86_v14 = vpop.f32.mrb[0].mxu0 }
  0xda   :  { %v95_v15 = vadd.f32 %v120_v12, %v94_v13  ;;  %v137_v16 = vpop.f32.mrb[1].mxu1  ;;  %v87_v17 = vadd.f32 %v120_v12, %v86_v14  ;;  %v133_v18 = vpop.f32.mrb[1].mxu0 }
  0xdb   :  { %v97_v19 = vpop.f32.mrb[2].mxu1  ;;  %v89_v20 = vpop.f32.mrb[2].mxu0 }
  0xdc   :  { %112 = vst.msk [vmem:[%s224_s3 + $0x10] sm:$0xff] %vm109_vm3, %v95_v15  ;;  %v98_v21 = vadd.f32 %v120_v12, %v97_v19  ;;  %v138_v22 = vpop.f32.mrb[3].mxu1  ;;  %110 = vst.msk [vmem:[%s224_s3] sm:$0xff] %vm109_vm3, %v87_v17  ;;  %v90_v23 = vadd.f32 %v120_v12, %v89_v20  ;;  %v134_v24 = vpop.f32.mrb[3].mxu0 }
  0xde   :  { %113 = vst.msk [vmem:[%s224_s3 + $0x18] sm:$0xff] %vm109_vm3, %v98_v21  ;;  %111 = vst.msk [vmem:[%s224_s3 + $0x8] sm:$0xff] %vm109_vm3, %v90_v23 }
  0xe1   :  { %v102_v25 = vpop.f32.mrb[4].mxu1 }
  0xe2   :  { %v103_v26 = vadd.f32 %v120_v12, %v102_v25  ;;  %v141_v27 = vpop.f32.mrb[5].mxu1 }
  0xe3   :  { %v105_v28 = vpop.f32.mrb[6].mxu1 }
  0xe4   :  { %114 = vst.msk [vmem:[%s224_s3 + $0x20] sm:$0xff] %vm109_vm3, %v103_v26  ;;  %v106_v29 = vadd.f32 %v120_v12, %v105_v28  ;;  %v142_v30 = vpop.f32.mrb[7].mxu1 }
  0xe6   :  { %115 = vst.msk [vmem:[%s224_s3 + $0x28] sm:$0xff] %vm109_vm3, %v106_v29 }

</bundles_post_ra>
